<compile_context>
chip_gen: v7x
topology: tpu7x:2x2x1
jax: 0.10.0
libtpu: 0.0.40
codegen_flags: <defaults>
</compile_context>

<pallas_src>
import functools

import jax
import jax.numpy as jnp
from jax.experimental import pallas as pl
from jax.experimental.pallas import tpu as pltpu


def _decoder_kernel(x_ref, w1_ref, b1_ref, w2_ref, b2_ref, o_ref, *, epilogue=None):
    x = x_ref[...]          # (TM, 3) f32
    w1 = w1_ref[...]        # (3, 64) f32

    # First linear: K=3 contraction as explicit VPU FMAs (exact f32, frees the MXU
    # result-FIFO / vex slot; a (TM,3)@(3,64) MXU matmul would be padded waste).
    h = x[:, 0:1] * w1[0:1, :]
    for k in range(1, x.shape[1]):
        h = h + x[:, k:k + 1] * w1[k:k + 1, :]
    h = jnp.maximum(h + b1_ref[...], 0.0)  # ReLU, (TM, 64) f32

    # Second linear (dominant): bf16 operands, f32 accumulation on the MXU.
    out = jnp.dot(h.astype(w2_ref.dtype), w2_ref[...],
                  preferred_element_type=jnp.float32)
    out = out + b2_ref[...]

    # Fuse any downstream elementwise op here (store-bound kernel -> VPU/EUP are free),
    # avoiding a full extra HBM round trip over the (B, 784) output.
    if epilogue is not None:
        out = epilogue(out)

    o_ref[...] = out.astype(o_ref.dtype)


def prepare_decoder_params(w1, b1, w2, b2):
    """One-time cast of parameters to kernel-ready dtypes.

    Hoists the per-call `w2.astype(bf16)` (a separate XLA op that re-reads/re-writes
    w2 from HBM every forward) out of decoder_forward. Call once at init.
    """
    return (w1.astype(jnp.float32),
            b1.astype(jnp.float32),
            w2.astype(jnp.bfloat16),   # bf16 operand for the dominant matmul
            b2.astype(jnp.float32))    # biases stay f32 (added post-accumulation)


def decoder_forward(x, params, *, block_m=None, out_dtype=jnp.float32, epilogue=None):
    """x: (B, 3) f32. params = prepare_decoder_params(w1, b1, w2, b2).

    w1: (3, 64), b1: (1, 64), w2: (64, 784) bf16, b2: (1, 784).
    Returns (B, 784) in `out_dtype` (f32 by default, matching the PyTorch module).
    """
    w1, b1, w2, b2 = params
    B, in_dim = x.shape
    hidden, out_dim = w2.shape
    assert w1.shape == (in_dim, hidden)
    assert b1.shape == (1, hidden) and b2.shape == (1, out_dim)

    if block_m is None:
        if B <= 512:
            # Small batch: single tile (grid=(1,)); per-step overhead dominates anyway.
            block_m = B
        else:
            # Large batch: at least 2 grid steps so both v7x TensorCores get work
            # ("parallel" axis), tiles capped at 2048 rows. A (2048, 784) f32 out tile
            # double-buffered is ~12.8 MiB -> fits the 32 MiB scoped VMEM limit on
            # every generation (incl. v7x's 64 MiB physical VMEM per TC).
            half = -(-B // 2)                      # ceil(B/2)
            block_m = min(2048, -(-half // 8) * 8)  # sublane-aligned
    # Last-two-dims rule: block_m must be a multiple of 8 unless it spans the whole batch.
    assert block_m == B or block_m % 8 == 0, "block_m must be a multiple of 8 (or == B)"

    grid = (pl.cdiv(B, block_m),)

    out_dtype = jnp.dtype(out_dtype)
    bytes_accessed = (
        x.size * x.dtype.itemsize
        + B * out_dim * out_dtype.itemsize
        + sum(int(p.size) * p.dtype.itemsize for p in (w1, b1, w2, b2))
    )
    cost = pl.CostEstimate(
        flops=2 * B * (in_dim * hidden + hidden * out_dim),
        transcendentals=0,
        bytes_accessed=int(bytes_accessed),
    )

    kernel = functools.partial(_decoder_kernel, epilogue=epilogue)

    # NOTE: out last dim 784 = 6*128 + 16 -> only the final lane group per row is a
    # masked store; padding to 896 would add 14% write bytes on a write-bound kernel.
    return pl.pallas_call(
        kernel,
        out_shape=jax.ShapeDtypeStruct((B, out_dim), out_dtype),
        grid=grid,
        in_specs=[
            pl.BlockSpec((block_m, in_dim), lambda i: (i, 0)),   # streamed x tiles
            pl.BlockSpec(w1.shape, lambda i: (0, 0)),            # VMEM-resident weights
            pl.BlockSpec(b1.shape, lambda i: (0, 0)),
            pl.BlockSpec(w2.shape, lambda i: (0, 0)),
            pl.BlockSpec(b2.shape, lambda i: (0, 0)),
        ],
        out_specs=pl.BlockSpec((block_m, out_dim), lambda i: (i, 0)),
        compiler_params=pltpu.CompilerParams(
            dimension_semantics=("parallel",),       # shard batch tiles across TCs on v7x
            vmem_limit_bytes=32 * 1024 * 1024,       # safe on all gens (v7x: 64 MiB physical)
        ),
        cost_estimate=cost,
    )(x, w1, b1, w2, b2)


def init_params(key, in_dim=3, hidden=64, out_dim=28 * 28, dtype=jnp.float32):
    """Deterministic init mirroring PyTorch nn.Linear default (U[-1/sqrt(fan_in), ...])."""
    k1, k2, k3, k4 = jax.random.split(key, 4)
    bound1 = 1.0 / jnp.sqrt(in_dim)
    bound2 = 1.0 / jnp.sqrt(hidden)
    # Stored as (in_features, out_features) so forward is x @ W.
    w1 = jax.random.uniform(k1, (in_dim, hidden), dtype, -bound1, bound1)
    b1 = jax.random.uniform(k2, (1, hidden), dtype, -bound1, bound1)
    w2 = jax.random.uniform(k3, (hidden, out_dim), dtype, -bound2, bound2)
    b2 = jax.random.uniform(k4, (1, out_dim), dtype, -bound2, bound2)
    return w1, b1, w2, b2


if __name__ == "__main__":
    key = jax.random.PRNGKey(0)
    kx, kp = jax.random.split(key)

    B = 32
    x = jax.random.normal(kx, (B, 3), dtype=jnp.float32)
    raw = init_params(kp)
    params = prepare_decoder_params(*raw)   # one-time bf16 cast, hoisted out of forward

    # Explicit small tile -> grid=(4,): exercises the batch grid / pipelining.
    out = decoder_forward(x, params, block_m=8)
    out = jax.block_until_ready(out)

    # Reference in plain f32 JAX (same math as the PyTorch module).
    w1, b1, w2, b2 = raw
    ref = jnp.maximum(x @ w1 + b1, 0.0) @ w2 + b2
    assert out.shape == (B, 28 * 28), out.shape
    # bf16 operands on the second matmul (f32 accumulation) -> loosened tolerance.
    assert jnp.allclose(out, ref, rtol=2e-2, atol=2e-2), "mismatch vs reference (block_m=8)"

    # Also exercise the default tile-size selection path (single tile at this B).
    out2 = jax.block_until_ready(decoder_forward(x, params))
    assert jnp.allclose(out2, ref, rtol=2e-2, atol=2e-2), "mismatch vs reference (default block_m)"

    print("KERNEL_OK")
</pallas_src>

<mosaic_0001>
module attributes {stable_mosaic.version = 11 : i64} {
  func.func @_decoder_kernel(%arg0: i32, %arg1: memref<8x3xf32, #tpu.memory_space<vmem>>, %arg2: memref<3x64xf32, #tpu.memory_space<vmem>>, %arg3: memref<1x64xf32, #tpu.memory_space<vmem>>, %arg4: memref<64x784xbf16, #tpu.memory_space<vmem>>, %arg5: memref<1x784xf32, #tpu.memory_space<vmem>>, %arg6: memref<8x784xf32, #tpu.memory_space<vmem>>) attributes {dimension_semantics = [#tpu.dimension_semantics<parallel>], iteration_bounds = array<i64: 4>, scalar_prefetch = 0 : i64, scratch_operands = 0 : i64, tpu.core_type = #tpu.core_type<tc>, window_params = [{transform_indices = @transform_0, window_bounds = array<i64: 8, 3>}, {pipeline_mode = #tpu.pipeline_mode<synchronous>, transform_indices = @transform_1, window_bounds = array<i64: 3, 64>}, {pipeline_mode = #tpu.pipeline_mode<synchronous>, transform_indices = @transform_2, window_bounds = array<i64: 1, 64>}, {pipeline_mode = #tpu.pipeline_mode<synchronous>, transform_indices = @transform_3, window_bounds = array<i64: 64, 784>}, {pipeline_mode = #tpu.pipeline_mode<synchronous>, transform_indices = @transform_4, window_bounds = array<i64: 1, 784>}, {transform_indices = @transform_5, window_bounds = array<i64: 8, 784>}]} {
    %c0 = arith.constant 0 : index
    %c0_0 = arith.constant 0 : index
    %0 = vector.load %arg1[%c0, %c0_0] : memref<8x3xf32, #tpu.memory_space<vmem>>, vector<8x3xf32>
    %c0_1 = arith.constant 0 : index
    %c0_2 = arith.constant 0 : index
    %1 = vector.load %arg2[%c0_1, %c0_2] : memref<3x64xf32, #tpu.memory_space<vmem>>, vector<3x64xf32>
    %2 = vector.extract_strided_slice %0 {offsets = [0, 0], sizes = [8, 1], strides = [1, 1]} : vector<8x3xf32> to vector<8x1xf32>
    %3 = vector.extract_strided_slice %1 {offsets = [0, 0], sizes = [1, 64], strides = [1, 1]} : vector<3x64xf32> to vector<1x64xf32>
    %4 = vector.broadcast %2 : vector<8x1xf32> to vector<8x64xf32>
    %5 = vector.broadcast %3 : vector<1x64xf32> to vector<8x64xf32>
    %6 = arith.mulf %4, %5 : vector<8x64xf32>
    %7 = vector.extract_strided_slice %0 {offsets = [0, 1], sizes = [8, 1], strides = [1, 1]} : vector<8x3xf32> to vector<8x1xf32>
    %8 = vector.extract_strided_slice %1 {offsets = [1, 0], sizes = [1, 64], strides = [1, 1]} : vector<3x64xf32> to vector<1x64xf32>
    %9 = vector.broadcast %7 : vector<8x1xf32> to vector<8x64xf32>
    %10 = vector.broadcast %8 : vector<1x64xf32> to vector<8x64xf32>
    %11 = arith.mulf %9, %10 : vector<8x64xf32>
    %12 = arith.addf %6, %11 : vector<8x64xf32>
    %13 = vector.extract_strided_slice %0 {offsets = [0, 2], sizes = [8, 1], strides = [1, 1]} : vector<8x3xf32> to vector<8x1xf32>
    %14 = vector.extract_strided_slice %1 {offsets = [2, 0], sizes = [1, 64], strides = [1, 1]} : vector<3x64xf32> to vector<1x64xf32>
    %15 = vector.broadcast %13 : vector<8x1xf32> to vector<8x64xf32>
    %16 = vector.broadcast %14 : vector<1x64xf32> to vector<8x64xf32>
    %17 = arith.mulf %15, %16 : vector<8x64xf32>
    %18 = arith.addf %12, %17 : vector<8x64xf32>
    %c0_3 = arith.constant 0 : index
    %c0_4 = arith.constant 0 : index
    %19 = vector.load %arg3[%c0_3, %c0_4] : memref<1x64xf32, #tpu.memory_space<vmem>>, vector<1x64xf32>
    %20 = vector.broadcast %19 : vector<1x64xf32> to vector<8x64xf32>
    %21 = arith.addf %18, %20 : vector<8x64xf32>
    %cst = arith.constant 0.000000e+00 : f32
    %22 = vector.broadcast %cst : f32 to vector<8x64xf32>
    %23 = arith.maximumf %21, %22 : vector<8x64xf32>
    %24 = arith.truncf %23 : vector<8x64xf32> to vector<8x64xbf16>
    %c0_5 = arith.constant 0 : index
    %c0_6 = arith.constant 0 : index
    %25 = vector.load %arg4[%c0_5, %c0_6] : memref<64x784xbf16, #tpu.memory_space<vmem>>, vector<64x784xbf16>
    %cst_7 = arith.constant dense<0.000000e+00> : vector<8x784xf32>
    %26 = tpu.matmul %24, %25, %cst_7 {dimension_numbers = #tpu.dot_dimension_numbers<[1], [0], [0], [1], [0, 0, 1, 1], [], []>} : vector<8x64xbf16>, vector<64x784xbf16>, vector<8x784xf32> -> vector<8x784xf32>
    %c0_8 = arith.constant 0 : index
    %c0_9 = arith.constant 0 : index
    %27 = vector.load %arg5[%c0_8, %c0_9] : memref<1x784xf32, #tpu.memory_space<vmem>>, vector<1x784xf32>
    %28 = vector.broadcast %27 : vector<1x784xf32> to vector<8x784xf32>
    %29 = arith.addf %26, %28 : vector<8x784xf32>
    %c0_10 = arith.constant 0 : index
    %c0_11 = arith.constant 0 : index
    %30 = vector.load %arg6[%c0_10, %c0_11] : memref<8x784xf32, #tpu.memory_space<vmem>>, vector<8x784xf32>
    tpu.vector_store %arg6[%c0_10, %c0_11], %29 {strides = array<i32>} : memref<8x784xf32, #tpu.memory_space<vmem>>, vector<8x784xf32>,
    return
  }
  func.func @transform_0(%arg0: i32) -> (i32, i32) {
    %c0_i32 = arith.constant 0 : i32
    %c0_i32_0 = arith.constant 0 : i32
    return %arg0, %c0_i32 : i32, i32
  }
  func.func @transform_1(%arg0: i32) -> (i32, i32) {
    %c0_i32 = arith.constant 0 : i32
    %c0_i32_0 = arith.constant 0 : i32
    %c0_i32_1 = arith.constant 0 : i32
    return %c0_i32, %c0_i32_0 : i32, i32
  }
  func.func @transform_2(%arg0: i32) -> (i32, i32) {
    %c0_i32 = arith.constant 0 : i32
    %c0_i32_0 = arith.constant 0 : i32
    %c0_i32_1 = arith.constant 0 : i32
    return %c0_i32, %c0_i32_0 : i32, i32
  }
  func.func @transform_3(%arg0: i32) -> (i32, i32) {
    %c0_i32 = arith.constant 0 : i32
    %c0_i32_0 = arith.constant 0 : i32
    %c0_i32_1 = arith.constant 0 : i32
    return %c0_i32, %c0_i32_0 : i32, i32
  }
  func.func @transform_4(%arg0: i32) -> (i32, i32) {
    %c0_i32 = arith.constant 0 : i32
    %c0_i32_0 = arith.constant 0 : i32
    %c0_i32_1 = arith.constant 0 : i32
    return %c0_i32, %c0_i32_0 : i32, i32
  }
  func.func @transform_5(%arg0: i32) -> (i32, i32) {
    %c0_i32 = arith.constant 0 : i32
    %c0_i32_0 = arith.constant 0 : i32
    return %arg0, %c0_i32 : i32, i32
  }
}

</mosaic_0001>

<bundles_post_ra>
// kernel: tpu_custom_call.1
= control target key start
LH: loop header
LB: loop body
LE: loop exit
PB: predicated region body
PF: predicated region fallthrough
CT: control target
= control target key end

     0   :  { %10 = vsyncpa [#allocation3], 0  ;;  %s1225_s0 = inlined_call_operand.vmem [shape: f32[32,3], index: 0, kind: input, shape index: {}]   ;;  %s1226_s1 = inlined_call_operand.vmem [shape: f32[3,64], index: 1, kind: input, shape index: {}]   ;;  %s1227_s2 = inlined_call_operand.vmem [shape: f32[1,64], index: 2, kind: input, shape index: {}]   ;;  %s1228_s3 = inlined_call_operand.hbm [shape: bf16[64,784], index: 3, kind: input, shape index: {}]   ;;  %s1229_s4 = inlined_call_operand.vmem [shape: f32[1,784], index: 4, kind: input, shape index: {}]   ;;  %s1230_s5 = inlined_call_operand.hbm [shape: f32[32,784], index: 5, kind: output, shape index: {}]  }
   0x1   :  { %11 = vsyncpa [#allocation4], 0 }
   0x2   :  { %13 = vsyncpa [#allocation4 + $0x1], 0  ;;  %s1050_s18 = smov 0   ;;  %s1052_s19 = smov 0  }
   0x3   :  { %s1054_s20 = smov 0   ;;  %s1056_s21 = smov 0  }
   0x4 LB: > { %s1071_s22 = sadd.s32 4294967295, %s1009_s21   ;;  %s752_s23 = sadd.s32 4294967294, %s1009_s21   ;;  %s1009_s21 = sphi %s1056_s21, %s1246_s21   ;;  %s1005_s20 = sphi %s1054_s20, %s1245_s20   ;;  %s1001_s19 = sphi %s1052_s19, %s1244_s19   ;;  %s997_s18 = sphi %s1050_s18, %s1243_s18  }
   0x5   : > { %s1075_s24 = sadd.s32 1, %s1009_s21   ;;  %s136_s25 = sadd.s32 1, %s1005_s20 }
   0x6   : > { %s133_s26 = ssub.s32 %s1009_s21, %s1075_s24  ;;  %p146_p0 = scmp.ne.s32.totalorder %s1005_s20, %s1001_s19 }
   0x7   : > { %p134_p1 = scmp.eq.s32.totalorder %s133_s26, 0  ;;  %p147_p2 = scmp.eq.s32.totalorder %s1071_s22, 3 }
   0x8   : > { %p152_p3 = scmp.ne.s32.totalorder %s1001_s19, %s997_s18  ;;  %p153_p4 = scmp.eq.s32.totalorder %s752_s23, 3 }
   0x9   : > { %s1086_s27 = scalar_select %p134_p1, %s1005_s20, %s136_s25  }
   0xa   : > { %p1088_p5 = por %p147_p2, %p146_p0  ;;  %p1092_p6 = por %p153_p4, %p152_p3 }
   0xb   : > { %p753_p7 = scmp.ge.s32.totalorder %s1009_s21, 1  ;;  %p160_p8 = scmp.lt.s32.totalorder %s1009_s21, 5 }
   0xc   : > { %s1234_s28 = scalar_select %p1088_p5, 1, 0 }
   0xd   : > { %s1235_s29 = scalar_select %p1092_p6, 1, 0 }
   0xe   : > { %p1231_p9 = scmp.eq.s32.totalorder %s1071_s22, 0  ;;  %p1099_p10 = pnand %p753_p7, %p160_p8 }
   0xf   : > { %s1011_s6 = smov [#allocation2]   ;;  %s915_s11 = scalar_lea.hbm %s1228_s3, 3584 }
  0x10   : > { %s1236_s30 = scalar_select %p1099_p10, 1, 0 }
  0x11   : > { %s178_s7 = sshll.u32 %s1011_s6, 4  ;;  %p820_p11 = pneg %p1099_p10  ;;  %s179_s7 = int_to_ptr.vmem [resolvable:$true] %s178_s7 }
  0x12   : > { %p916_p13 = scmp.ne.s32.totalorder %s1228_s3, %s915_s11  ;;  %p922_p3 = scmp.lt.u32.totalorder %s915_s11, %s1228_s3 }
  0x13   : > { %p1107_p12 = pnand %p1231_p9, %p820_p11 }
  0x15   : > { %p917_p0 = pneg %p1107_p12 }
  0x17   : > { %p918_p1 = pnand %p917_p0, %p916_p13 }
  0x19   : > { %p919_p2 = pneg %p918_p1 }
  0x1b   : > { %p924_p4 = pnand %p922_p3, %p919_p2 }
  0x1d   : > { %927 = shalt.err (!%p924_p4)
}
  0x1e   : > { %s928_s16 = scalar_lea.vmem %s179_s7, 3584  ;;  %p936_p9 = scmp.lt.s32.totalorder %s179_s7, %s179_s7 }
  0x1f   : > { %p929_p7 = scmp.ne.s32.totalorder %s179_s7, %s928_s16  ;;  %p937_p6 = scmp.lt.s32.totalorder %s928_s16, %s928_s16 }
  0x21   : > { %p931_p8 = pnand %p929_p7, %p917_p0  ;;  %p938_p5 = por %p937_p6, %p936_p9 }
  0x23   : > { %p932_p11 = pneg %p931_p8 }
  0x25   : > { %p939_p10 = pnand %p938_p5, %p932_p11 }
  0x27   : > { %942 = shalt.err (!%p939_p10)
}
  0x28   : > { %s1012_s17 = smov 448   ;;  %s1013_s23 = smov 28  }
  0x29   : > { %823 = dma.hbm_to_vmem [thread:$0]  (!%p1107_p12), %s1228_s3, 3584, %s179_s7, [#allocation3], %s1012_s17, %s1012_s17, %s1013_s23  }
  0x2a   : > { %p1238_p13 = scmp.ne.s32.totalorder %s1236_s30, 0 }
  0x2b   : > { %p1239_p1 = scmp.eq.s32.totalorder (!%p1238_p13), %s1071_s22, 0 }
  0x2c   : > { %204 = sbr.rel (%p1238_p13) target bundleno = 449 (0x1c1), region = 40 }
  0x33   : > { %988 = dma.done.wait (%p1239_p1), [#allocation3], 3584   ;;  %p1240_p0 = pmov %p1239_p1 }
  0x34   : > { %p231_p5 = scmp.lt.s32.totalorder %s1071_s22, 3  ;;  %v1014_v0 = vmov 0   ;;  %v1015_v1 = vmov 2   ;;  %v875_v3 = vld [vmem:[#allocation2 + $0x4] ss:$28 sps:$4 sm:$0xff]   ;;  %v1016_v8 = vmov 1   ;;  %v243_v22 = vlaneseq }
  0x35   : > { %990 = vsyncadd (%p1240_p0), [#allocation3], 4294963712  ;;  %871 = vset.pattern.permute.xlu0 %v1014_v0  ;;  %873 = vset.pattern.permute.xlu1 %v1015_v1  ;;  %v877_v4 = vld [vmem:[#allocation2 + $0xc] ss:$28 sps:$4 sm:$0xff]   ;;  %v879_v5 = vld [vmem:[#allocation2] ss:$28 sps:$4 sm:$0xff]  }
  0x36   : > { %s232_s6 = scalar_select %p231_p5, %s1071_s22, 3  ;;  %527 = vmatprep.mubr.bf16.mxu0 %v1014_v0  ;;  %568 = vmatprep.mubr.bf16.mxu1 %v1014_v0  ;;  %v880_v6 = vld [vmem:[#allocation2 + $0x8] ss:$28 sps:$4 sm:$0xff]   ;;  %v881_v7 = vld [vmem:[#allocation2 + $0x3c] ss:$28 sps:$4 sm:$0xff]   ;;  %v1017_v21 = vmov 0.0  }
  0x37   : > { %495 = vmatprep.subr.bf16.mxu0 %v875_v3  ;;  %536 = vmatprep.subr.bf16.mxu1 %v877_v4  ;;  %v883_v9 = vld [vmem:[#allocation2 + $0x44] ss:$28 sps:$4 sm:$0xff]   ;;  %v885_v10 = vld [vmem:[#allocation2 + $0x38] ss:$28 sps:$4 sm:$0xff]   ;;  %v891_v14 = vld [vmem:[#allocation2 + $0x70] ss:$28 sps:$4 sm:$0xff]  }
  0x38   : > { %s758_s30 = sshll.u32 %s232_s6, 3  ;;  %496 = vmatpush1.bf16.msra.mxu0 %v879_v5  ;;  %537 = vmatpush1.bf16.msra.mxu1 %v880_v6  ;;  %v886_v11 = vld [vmem:[#allocation2 + $0x40] ss:$28 sps:$4 sm:$0xff]   ;;  %v887_v12 = vld [vmem:[#allocation2 + $0x74] ss:$28 sps:$4 sm:$0xff]   ;;  %v1141_v23 = vshrl.u32 %v243_v22, 7 }
  0x39   : > { %s234_s9 = scalar_lea.vmem %s1225_s0, %s758_s30  ;;  %497 = vmatprep.subr.bf16.mxu0 %v881_v7  ;;  %538 = vmatprep.subr.bf16.mxu1 %v883_v9  ;;  %v889_v13 = vld [vmem:[#allocation2 + $0x7c] ss:$28 sps:$4 sm:$0xff]   ;;  %v893_v16 = vld [vmem:[#allocation2 + $0xac] ss:$28 sps:$4 sm:$0xff]   ;;  %v895_v17 = vld [vmem:[#allocation2 + $0xb4] ss:$28 sps:$4 sm:$0xff]  }
  0x3a   : > { %v236_v2 = vld [vmem:[%s234_s9] sm:$0xff]  ;;  %v892_v15 = vld [vmem:[#allocation2 + $0x78] ss:$28 sps:$4 sm:$0xff]   ;;  %v898_v19 = vld [vmem:[#allocation2 + $0xb0] ss:$28 sps:$4 sm:$0xff]   ;;  %v245_v24 = vsub.s32 0, %v1141_v23 }
  0x3b   : > { %240 = vperm.xlu0 %871, %v236_v2   ;;  %259 = vperm.xlu1 %873, %v236_v2   ;;  %v897_v18 = vld [vmem:[#allocation2 + $0xa8] ss:$28 sps:$4 sm:$0xff]   ;;  %v901_v20 = vld [vmem:[#allocation2 + $0x14] ss:$28 sps:$4 sm:$0xff]   ;;  %v254_v25 = vsub.s32 1, %v1141_v23  ;;  %v264_v26 = vsub.s32 2, %v1141_v23 }
  0x3c   : > { %498 = vmatpush1.bf16.msra.mxu0 %v885_v10  ;;  %539 = vmatpush1.bf16.msra.mxu1 %v886_v11  ;;  %v237_v27 = vld [vmem:[%s1226_s1] sm:$0x7]  ;;  %v899_v42 = vld [vmem:[#allocation2 + $0x10] ss:$28 sps:$4 sm:$0xff]   ;;  %vm491_vm0 = vcmask 523264   ;;  %vm1018_vm1 = vmmov 0  }
  0x3d   : > { %499 = vmatprep.subr.bf16.mxu0 %v887_v12  ;;  %540 = vmatprep.subr.bf16.mxu1 %v889_v13  ;;  %v246_v29 = vrot.slane %v237_v27, %v245_v24  ;;  %v255_v30 = vrot.slane %v237_v27, %v254_v25  ;;  %v265_v31 = vrot.slane %v237_v27, %v264_v26  ;;  %v759_v38 = vld [vmem:[%s1227_s2] ss:$0 sm:$0xff]  ;;  %v902_v43 = vld [vmem:[#allocation2 + $0x18] ss:$28 sps:$4 sm:$0xff]   ;;  %v905_v45 = vld [vmem:[#allocation2 + $0x4c] ss:$28 sps:$4 sm:$0xff]  }
  0x3e   : > { %v903_v46 = vld [vmem:[#allocation2 + $0x48] ss:$28 sps:$4 sm:$0xff]   ;;  %v906_v47 = vld [vmem:[#allocation2 + $0x50] ss:$28 sps:$4 sm:$0xff]   ;;  %v907_v49 = vld [vmem:[#allocation2 + $0x80] ss:$28 sps:$4 sm:$0xff]  }
  0x3f   : > { %872 = vset.pattern.permute.xlu0 %v1016_v8  ;;  %v909_v48 = vld [vmem:[#allocation2 + $0x84] ss:$28 sps:$4 sm:$0xff]   ;;  %v913_v51 = vld [vmem:[#allocation2 + $0xbc] ss:$28 sps:$4 sm:$0xff]   ;;  %s228_s14 = sand.u32 1, %s1001_s19   ;;  %v326_v55 = vsub.s32 3, %v1141_v23 }
  0x40   : > { %249 = vperm.xlu0 %872, %v236_v2   ;;  %500 = vmatpush1.bf16.msra.mxu0 %v891_v14  ;;  %v910_v50 = vld [vmem:[#allocation2 + $0x88] ss:$28 sps:$4 sm:$0xff]   ;;  %v911_v52 = vld [vmem:[#allocation2 + $0xb8] ss:$28 sps:$4 sm:$0xff]   ;;  %v914_v53 = vld [vmem:[#allocation2 + $0xc0] ss:$28 sps:$4 sm:$0xff]  }
  0x41   : > { %541 = vmatpush1.bf16.msra.mxu1 %v892_v15  ;;  %501 = vmatprep.subr.bf16.mxu0 %v893_v16  ;;  %v310_v54 = vld [vmem:[%s1229_s4] sm:$0x7f]  ;;  %s812_s17 = smul.u32 56, %s228_s14  ;;  %v330_v8 = vsub.s32 4, %v1141_v23  ;;  %v338_v9 = vsub.s32 6, %v1141_v23  ;;  %v334_v10 = vsub.s32 5, %v1141_v23 }
  0x42   : > { %542 = vmatprep.subr.bf16.mxu1 %v895_v17  ;;  %v315_v56 = vrot.slane %v310_v54, %v245_v24  ;;  %v323_v57 = vrot.slane %v310_v54, %v264_v26  ;;  %v319_v58 = vrot.slane %v310_v54, %v254_v25  ;;  %v327_v59 = vrot.slane %v310_v54, %v326_v55  ;;  %s813_s25 = smul.u32 896, %s1071_s22  ;;  %s667_s22 = scalar_lea.sflag [#allocation4], %s228_s14 }
  0x43   : > { %s1164_s23 = scalar_lea.vmem [#allocation5], %s812_s17  ;;  %v331_v11 = vrot.slane %v310_v54, %v330_v8  ;;  %v339_v12 = vrot.slane %v310_v54, %v338_v9  ;;  %v335_v13 = vrot.slane %v310_v54, %v334_v10  ;;  %vm664_vm2 = vcmask 130048   ;;  %p1241_p9 = scmp.ne.s32.totalorder %s1234_s28, 0 }
  0x44   : > { %874 = vset.pattern.permute.xlu0 %v1015_v1  ;;  %502 = vmatpush1.bf16.msra.mxu0 %v897_v18  ;;  %s681_s26 = sshll.u32 %s1164_s23, 4  ;;  %s1178_s7 = scalar_lea.hbm %s1230_s5, %s813_s25  ;;  %s1180_s26 = int_to_ptr.vmem [resolvable:$true] %s681_s26 }
  0x45   : > { %543 = vmatpush1.bf16.msra.mxu1 %v898_v19  ;;  %577 = vmatprep.subr.bf16.mxu0 %v901_v20  ;;  %s943_s8 = scalar_lea.vmem %s1180_s26, 896  ;;  %s1019_s9 = smov [#allocation5]  }
  0x46   : > { %800 = vmatprep.subr.bf16.mxu1 %v1017_v21  ;;  %p944_p6 = scmp.ne.s32.totalorder %s1180_s26, %s943_s8  ;;  %s947_s10 = sshll.u32 %s1019_s9, 4  ;;  %s948_s10 = int_to_ptr.vmem [resolvable:$false] %s947_s10 }
  0x47   : > { %s949_s11 = scalar_lea.vmem %s948_s10, 1792  ;;  %p950_p2 = scmp.lt.s32.totalorder %s1180_s26, %s948_s10 }
  0x48   : > { %p945_p10 = pnand %p944_p6, %p1241_p9  ;;  %p951_p3 = scmp.lt.s32.totalorder %s949_s11, %s943_s8 }
  0x4a   : > { %p946_p12 = pneg %p945_p10  ;;  %p952_p4 = por %p951_p3, %p950_p2 }
  0x4c   : > { %p953_p7 = pnand %p952_p4, %p946_p12 }
  0xba   : > { %v241_v28 = vpop.permute.xlu0 %240  ;;  %v260_v32 = vpop.permute.xlu1 %259 }
  0xbb   : > { %v247_v34 = vmul.f32 %v246_v29, %v241_v28  ;;  %v266_v36 = vmul.f32 %v265_v31, %v260_v32 }
  0xbf   : > { %v250_v33 = vpop.permute.xlu0 %249 }
  0xc0   : > { %v256_v35 = vmul.f32 %v255_v30, %v250_v33 }
  0xc2   : > { %v257_v37 = vadd.f32 %v256_v35, %v247_v34 }
  0xc4   : > { %v267_v39 = vadd.f32 %v266_v36, %v257_v37 }
  0xc6   : > { %v275_v40 = vadd.f32 %v759_v38, %v267_v39 }
  0xc8   : > { %v276_v41 = vmax.f32 %v275_v40, 0.0 }
  0xca   : > { %v277_v44 = vpack.c.bf16 %v276_v41, %v276_v41 }
  0xcc   : > { %788 = vmatmul.mubr.msk.bf16.vlgmr.msra.gmra.mrb[0].mxu0 %vm491_vm0, %v277_v44  ;;  %789 = vmatmul.mubr.msk.bf16.vlgmr.msra.gmra.mrb[0].mxu1 %vm491_vm0, %v277_v44 }
  0xcd   : > { %578 = vmatpush1.bf16.msra.mxu0 %v899_v42  ;;  %801 = vmatpush3.bf16.msra.mxu1 %v902_v43 }
  0xce   : > { %579 = vmatprep.subr.bf16.mxu0 %v905_v45  ;;  %802 = vmatprep.subr.bf16.mxu1 %v1017_v21 }
  0xcf   : > { %609 = vmatprep.mubr.bf16.mxu0 %v1014_v0  ;;  %808 = vmatprep.mubr.msk.bf16.mxu1 %vm1018_vm1, %v1017_v21 }
  0xd1   : > { %580 = vmatpush1.bf16.msra.mxu0 %v903_v46  ;;  %803 = vmatpush3.bf16.msra.mxu1 %v906_v47 }
  0xd2   : > { %581 = vmatprep.subr.bf16.mxu0 %v909_v48  ;;  %804 = vmatprep.subr.bf16.mxu1 %v1017_v21 }
  0xd5   : > { %582 = vmatpush1.bf16.msra.mxu0 %v907_v49  ;;  %805 = vmatpush3.bf16.msra.mxu1 %v910_v50 }
  0xd6   : > { %583 = vmatprep.subr.bf16.mxu0 %v913_v51  ;;  %806 = vmatprep.subr.bf16.mxu1 %v1017_v21 }
  0xd9   : > { %584 = vmatpush1.bf16.msra.mxu0 %v911_v52  ;;  %807 = vmatpush3.bf16.msra.mxu1 %v914_v53 }
  0xdc   : > { %790 = vmatmul.mubr.msk.bf16.vlgmr.msra.gmra.mrb[4].mxu0 %vm491_vm0, %v277_v44  ;;  %809 = vmatmul.mubr.msk.bf16.vlgmr.msra.gmra.mrb[4].mxu1 %vm491_vm0, %v277_v44 }
 0x19f   : > { %v529_v60 = vpop.f32.mrb[0].mxu0  ;;  %v570_v61 = vpop.f32.mrb[0].mxu1 }
 0x1a0   : > { %v530_v62 = vadd.f32 %v529_v60, %v315_v56  ;;  %v571_v63 = vadd.f32 %v570_v61, %v323_v57  ;;  %v531_v0 = vpop.f32.mrb[1].mxu0  ;;  %v572_v1 = vpop.f32.mrb[1].mxu1 }
 0x1a1   : > { %v532_v2 = vadd.f32 %v531_v0, %v319_v58  ;;  %v573_v3 = vadd.f32 %v572_v1, %v327_v59  ;;  %v533_v4 = vpop.f32.mrb[2].mxu0  ;;  %v574_v5 = vpop.f32.mrb[2].mxu1 }
 0x1a2   : > { %658 = vst [vmem:[%s1164_s23] sm:$0xff] %v530_v62  ;;  %660 = vst [vmem:[%s1164_s23 + $0x10] sm:$0xff] %v571_v63  ;;  %v534_v6 = vpop.f32.mrb[3].mxu0  ;;  %v575_v7 = vpop.f32.mrb[3].mxu1 }
 0x1a3   : > { %659 = vst [vmem:[%s1164_s23 + $0x8] sm:$0xff] %v532_v2  ;;  %661 = vst [vmem:[%s1164_s23 + $0x18] sm:$0xff] %v573_v3 }
 0x1af   : > { %v611_v14 = vpop.f32.mrb[4].mxu0  ;;  %v652_v15 = vpop.f32.mrb[4].mxu1 }
 0x1b0   : > { %v612_v16 = vadd.f32 %v611_v14, %v331_v11  ;;  %v653_v17 = vadd.f32 %v652_v15, %v339_v12  ;;  %v613_v18 = vpop.f32.mrb[5].mxu0  ;;  %v810_v19 = vpop.f32.mrb[5].mxu1 }
 0x1b1   : > { %v614_v20 = vadd.f32 %v613_v18, %v335_v13  ;;  %v615_v21 = vpop.f32.mrb[6].mxu0  ;;  %v655_v22 = vpop.f32.mrb[6].mxu1 }
 0x1b2   : > { %662 = vst [vmem:[%s1164_s23 + $0x20] sm:$0xff] %v612_v16  ;;  %665 = vst.msk [vmem:[%s1164_s23 + $0x30] sm:$0xff] %vm664_vm2, %v653_v17  ;;  %v616_v23 = vpop.f32.mrb[7].mxu0  ;;  %v811_v24 = vpop.f32.mrb[7].mxu1 }
 0x1b3   : > { %663 = vst [vmem:[%s1164_s23 + $0x28] sm:$0xff] %v614_v20 }
 0x1b4   : > { %956 = shalt.err (!%p953_p7)
}
 0x1b5   : > { %s957_s12 = scalar_lea.hbm %s1178_s7, 896  ;;  %s961_s15 = scalar_lea.hbm %s1230_s5, 3584 }
 0x1b6   : > { %p958_p8 = scmp.ne.s32.totalorder %s1178_s7, %s957_s12  ;;  %p962_p1 = scmp.lt.u32.totalorder %s1178_s7, %s1230_s5 }
 0x1b7   : > { %p963_p0 = scmp.lt.u32.totalorder %s961_s15, %s957_s12  ;;  %p965_p6 = scmp.lt.u32.totalorder %s957_s12, %s1178_s7 }
 0x1b8   : > { %p959_p11 = pnand %p958_p8, %p1241_p9 }
 0x1b9   : > { %p964_p5 = por %p963_p0, %p962_p1 }
 0x1ba   : > { %p960_p13 = pneg %p959_p11 }
 0x1bb   : > { %p966_p10 = por %p965_p6, %p964_p5 }
 0x1bd   : > { %p967_p12 = pnand %p966_p10, %p960_p13 }
 0x1bf   : > { %970 = shalt.err (!%p967_p12)
}
 0x1c0   : > { %818 = dma.vmem_to_hbm [thread:$0]  (%p1241_p9), %s1180_s26, 896, %s1178_s7, %s667_s22  }
 0x1c1 PF: > { %p830_p2 = scmp.ge.s32.totalorder %s1009_s21, 2  ;;  %s693_s23 = sand.u32 1, %s997_s18  }
 0x1c2   : > { %p1242_p3 = scmp.ne.s32.totalorder %s1235_s29, 0  ;;  %s694_s25 = scalar_lea.sflag [#allocation4], %s693_s23 }
 0x1c4   : > { %p825_p4 = pnand %p830_p2, %p1242_p3 }
 0x1c6   : > { %992 = dma.done.wait (!%p825_p4), %s694_s25, 896  }
 0x1c7   : > { %994 = vsyncadd (!%p825_p4), %s694_s25, 4294966400  ;;  %p16_p7 = scmp.ge.s32.totalorder %s1075_s24, 6   ;;  %s1243_s18 = smov %s1001_s19 }
 0x1c8   : > { %s1244_s19 = smov %s1005_s20  ;;  %s1245_s20 = smov %s1086_s27 }
 0x1c9   : > { %s1246_s21 = smov %s1075_s24  ;;  %18 = sbr.rel (!%p16_p7) target bundleno = 4 (0x4), region = 80 }
 0x1d0   :  { %699 = vsyncpa [#allocation3], 1 }
 0x1d1   :  { %701 = vsyncpa [#allocation3 + $0x1], 1 }
 0x1d2   :  { %702 = vsyncpa [#allocation4], 1 }
 0x1d3   :  { %704 = vsyncpa [#allocation4 + $0x1], 1 }

</bundles_post_ra>
